<compile_context>
chip_gen: v5e
topology: v5e:2x2
jax: 0.10.0
libtpu: 0.0.40
codegen_flags: <defaults>
</compile_context>

<pallas_src>
import jax
import jax.numpy as jnp
from jax.experimental import pallas as pl
from jax.experimental.pallas import tpu as pltpu

EPS = 1e-12  # torch.nn.functional.normalize default eps


def _round_up(v, m):
    return ((v + m - 1) // m) * m


def _block_byte_budget():
    """Target bytes per block; larger on v7x (faster HBM, same per-step cost)."""
    budget = 4 << 20
    try:
        # v7x exposes only 64 MiB VMEM per TC but ~3.2 TB/s HBM -> bigger
        # blocks amortize the ~0.35 us per-step overhead better there.
        if pltpu.get_tpu_info().vmem_capacity_bytes <= (64 << 20):
            budget = 6 << 20
    except Exception:
        pass
    return budget


def _compiler_params(block_bytes, semantics):
    # (in + out) double-buffered plus headroom; covers the 16/32 MiB default
    # scoped limits while staying well under v7x's 64 MiB physical VMEM.
    limit = int(min(48 << 20, max(32 << 20, 4 * block_bytes + (4 << 20))))
    return pltpu.CompilerParams(dimension_semantics=semantics,
                                vmem_limit_bytes=limit)


# ---------------------------------------------------------------------------
# Kernels
# ---------------------------------------------------------------------------
def _l2norm_kernel_reduce_c(x_ref, o_ref):
    # Block: (B, C, L).  Reduce the L2 sum over C (axis 1, sublanes); lanes stay dense.
    x = x_ref[...]
    xf = x.astype(jnp.float32)
    ss = jnp.sum(xf * xf, axis=1, keepdims=True)            # (B, 1, L), f32
    inv = jax.lax.rsqrt(jnp.maximum(ss, EPS * EPS))          # == 1 / max(sqrt(ss), EPS)
    o_ref[...] = (x * inv.astype(x.dtype)).astype(o_ref.dtype)


def _l2norm_kernel_lane_c(x_ref, o_ref):
    # Block: (TR, C).  Reduce over lanes (C) via XLU; rows stay on sublanes.
    x = x_ref[...]
    xf = x.astype(jnp.float32)
    ss = jnp.sum(xf * xf, axis=-1, keepdims=True)            # (TR, 1), f32
    inv = jax.lax.rsqrt(jnp.maximum(ss, EPS * EPS))
    o_ref[...] = (x * inv.astype(x.dtype)).astype(o_ref.dtype)


# ---------------------------------------------------------------------------
# Wrappers
# ---------------------------------------------------------------------------
def _l2norm_nchw(x3):
    """x3: (N, C, HW); normalize over C.  No pads, no transposes, no slices."""
    n, c, hw = x3.shape
    itemsize = jnp.dtype(x3.dtype).itemsize
    min_sub = 8 * max(1, 4 // itemsize)                      # sublane packing granule
    c_pad = _round_up(c, min_sub)
    budget = _block_byte_budget()

    if hw >= 128:
        # HW on the lane axis; Pallas masks the ragged last block.
        thw = (budget // (c_pad * itemsize)) // 128 * 128
        thw = max(128, min(thw, _round_up(hw, 128)))
        # Keep >= 8 grid steps so both TensorCores / megacore stay busy and the
        # input/output double-buffering has work to overlap.
        while n * pl.cdiv(hw, thw) < 8 and thw > 128:
            thw = max(128, ((thw // 2) // 128) * 128)
        grid = (n, pl.cdiv(hw, thw))
        spec = pl.BlockSpec((1, c, thw), lambda i, j: (i, 0, j))
        semantics = ("parallel", "parallel")
        block_bytes = c_pad * thw * itemsize
    else:
        # Small spatial extent: full-C, full-HW block (legal: equals array dims),
        # batch BN images per grid step to amortize per-step overhead.
        slab = c_pad * 128 * itemsize                        # per-image VMEM footprint
        bn = max(1, min(n, budget // slab))
        grid = (pl.cdiv(n, bn),)
        spec = pl.BlockSpec((bn, c, hw), lambda i: (i, 0, 0))
        semantics = ("parallel",)
        block_bytes = bn * slab

    return pl.pallas_call(
        _l2norm_kernel_reduce_c,
        out_shape=jax.ShapeDtypeStruct((n, c, hw), x3.dtype),
        grid_spec=pltpu.PrefetchScalarGridSpec(
            num_scalar_prefetch=0,
            grid=grid,
            in_specs=[spec],
            out_specs=spec,
        ),
        compiler_params=_compiler_params(block_bytes, semantics),
    )(x3)


def _l2norm_2d(x):
    """x: (N, C); normalize over C (lane axis).  Fed directly, no transposes."""
    n, c = x.shape
    itemsize = jnp.dtype(x.dtype).itemsize
    budget = _block_byte_budget()
    row_bytes = _round_up(c, 128) * itemsize
    tr = max(8, (budget // row_bytes) // 8 * 8)
    if tr >= n:
        tr = n                                               # single full-dim block
    else:
        while pl.cdiv(n, tr) < 8 and tr > 8:
            tr = max(8, (tr // 2) // 8 * 8)
    grid = (pl.cdiv(n, tr),)
    spec = pl.BlockSpec((tr, c), lambda i: (i, 0))
    block_bytes = tr * row_bytes

    return pl.pallas_call(
        _l2norm_kernel_lane_c,
        out_shape=jax.ShapeDtypeStruct((n, c), x.dtype),
        grid_spec=pltpu.PrefetchScalarGridSpec(
            num_scalar_prefetch=0,
            grid=grid,
            in_specs=[spec],
            out_specs=spec,
        ),
        compiler_params=_compiler_params(block_bytes, ("parallel",)),
    )(x)


def l2norm(x, dim=1):
    """Matches torch.nn.functional.normalize(x, p=2, dim=1) for (N,C) / (N,C,H,W)."""
    if dim != 1:
        raise NotImplementedError("kernel implements F.normalize(p=2, dim=1)")
    if x.ndim == 2:
        return _l2norm_2d(x)
    if x.ndim == 4:
        n, c, h, w = x.shape
        return _l2norm_nchw(x.reshape(n, c, h * w)).reshape(x.shape)
    raise NotImplementedError("expected 2D (N, C) or 4D (N, C, H, W) input")


# ---------------------------------------------------------------------------
# Self-test
# ---------------------------------------------------------------------------
if __name__ == "__main__":
    def ref(x):
        ss = jnp.sum(jnp.square(x.astype(jnp.float32)), axis=1, keepdims=True)
        return (x.astype(jnp.float32) / jnp.maximum(jnp.sqrt(ss), EPS)).astype(x.dtype)

    # Main path: NCHW with HW >= 128 (HW on the lane axis).
    x = jax.random.normal(jax.random.PRNGKey(0), (2, 4, 16, 16), dtype=jnp.float32)
    y = jax.block_until_ready(l2norm(x))
    assert jnp.allclose(y, ref(x), atol=1e-5, rtol=1e-5), "mismatch (HW-lane path)"

    # Ragged lane tail: HW = 14*14 = 196 is not a multiple of the 128 tile.
    x_r = jax.random.normal(jax.random.PRNGKey(1), (2, 8, 14, 14), dtype=jnp.float32)
    y_r = jax.block_until_ready(l2norm(x_r))
    assert jnp.allclose(y_r, ref(x_r), atol=1e-5, rtol=1e-5), "mismatch (ragged tail)"

    # Small spatial extent: embedding-like NCHW, HW < 128, no transposes.
    x_s = jax.random.normal(jax.random.PRNGKey(2), (4, 32, 1, 1), dtype=jnp.float32)
    y_s = jax.block_until_ready(l2norm(x_s))
    assert jnp.allclose(y_s, ref(x_s), atol=1e-5, rtol=1e-5), "mismatch (small-HW path)"

    # 2-D (N, C) embeddings straight into the lane-C kernel.
    x_e = jax.random.normal(jax.random.PRNGKey(3), (8, 32), dtype=jnp.float32)
    y_e = jax.block_until_ready(l2norm(x_e))
    assert jnp.allclose(y_e, ref(x_e), atol=1e-5, rtol=1e-5), "mismatch (2-D path)"

    print("KERNEL_OK")
</pallas_src>

<mosaic_0001>
module attributes {stable_mosaic.version = 11 : i64} {
  func.func @_l2norm_kernel_reduce_c(%arg0: i32, %arg1: i32, %arg2: memref<1x4x128xf32, #tpu.memory_space<vmem>>, %arg3: memref<1x4x128xf32, #tpu.memory_space<vmem>>) attributes {dimension_semantics = [#tpu.dimension_semantics<parallel>, #tpu.dimension_semantics<parallel>], iteration_bounds = array<i64: 2, 2>, scalar_prefetch = 0 : i64, scratch_operands = 0 : i64, tpu.core_type = #tpu.core_type<tc>, window_params = [{transform_indices = @transform_0, window_bounds = array<i64: 1, 4, 128>}, {transform_indices = @transform_1, window_bounds = array<i64: 1, 4, 128>}]} {
    %c0 = arith.constant 0 : index
    %c0_0 = arith.constant 0 : index
    %c0_1 = arith.constant 0 : index
    %0 = vector.load %arg2[%c0, %c0_0, %c0_1] : memref<1x4x128xf32, #tpu.memory_space<vmem>>, vector<1x4x128xf32>
    %1 = arith.mulf %0, %0 : vector<1x4x128xf32>
    %cst = arith.constant dense<0.000000e+00> : vector<1x128xf32>
    %2 = vector.multi_reduction <add>, %1, %cst [1] : vector<1x4x128xf32> to vector<1x128xf32>
    %3 = vector.shape_cast %2 : vector<1x128xf32> to vector<1x1x128xf32>
    %cst_2 = arith.constant 1.000000e-24 : f32
    %4 = vector.broadcast %cst_2 : f32 to vector<1x1x128xf32>
    %5 = arith.maximumf %3, %4 : vector<1x1x128xf32>
    %6 = math.rsqrt %5 : vector<1x1x128xf32>
    %7 = vector.broadcast %6 : vector<1x1x128xf32> to vector<1x4x128xf32>
    %8 = arith.mulf %0, %7 : vector<1x4x128xf32>
    %c0_3 = arith.constant 0 : index
    %c0_4 = arith.constant 0 : index
    %c0_5 = arith.constant 0 : index
    %9 = vector.load %arg3[%c0_3, %c0_4, %c0_5] : memref<1x4x128xf32, #tpu.memory_space<vmem>>, vector<1x4x128xf32>
    tpu.vector_store %arg3[%c0_3, %c0_4, %c0_5], %8 {strides = array<i32>} : memref<1x4x128xf32, #tpu.memory_space<vmem>>, vector<1x4x128xf32>,
    return
  }
  func.func @transform_0(%arg0: i32, %arg1: i32) -> (i32, i32, i32) {
    %c0_i32 = arith.constant 0 : i32
    %c0_i32_0 = arith.constant 0 : i32
    return %arg0, %c0_i32, %arg1 : i32, i32, i32
  }
  func.func @transform_1(%arg0: i32, %arg1: i32) -> (i32, i32, i32) {
    %c0_i32 = arith.constant 0 : i32
    %c0_i32_0 = arith.constant 0 : i32
    return %arg0, %c0_i32, %arg1 : i32, i32, i32
  }
}

</mosaic_0001>

<bundles_post_ra>
// kernel: tpu_custom_call.1
= control target key start
LH: loop header
LB: loop body
LE: loop exit
PB: predicated region body
PF: predicated region fallthrough
CT: control target
= control target key end

     0   :  { %6 = vsyncpa [#allocation3], 0  ;;  %s655_s0 = inlined_call_operand.hbm [shape: f32[2,4,256], index: 0, kind: input, shape index: {}]   ;;  %s656_s1 = inlined_call_operand.hbm [shape: f32[2,4,256], index: 1, kind: output, shape index: {}]  }
   0x1   :  { %8 = vsyncpa [#allocation3 + $0x1], 0 }
   0x2   :  { %9 = vsyncpa [#allocation4], 0 }
   0x3   :  { %11 = vsyncpa [#allocation4 + $0x1], 0  ;;  %s513_s6 = smov 0   ;;  %s515_s7 = smov 0  }
   0x4   :  { %s517_s8 = smov 0   ;;  %s519_s9 = smov 0  }
   0x5   :  { %s521_s10 = smov 0   ;;  %s523_s11 = smov 0  }
   0x6   :  { %s525_s12 = smov 0   ;;  %s527_s13 = smov 0  }
   0x7 LB: > { %s278_s14 = sadd.s32 4294967295, %s501_s13   ;;  %s279_s15 = sadd.s32 4294967294, %s501_s13   ;;  %s501_s13 = sphi %s527_s13, %s17_s13   ;;  %s497_s12 = sphi %s525_s12, %s667_s12   ;;  %s493_s11 = sphi %s523_s11, %s666_s11   ;;  %s489_s10 = sphi %s521_s10, %s665_s10   ;;  %s485_s9 = sphi %s519_s9, %s664_s9   ;;  %s481_s8 = sphi %s517_s8, %s663_s8   ;;  %s477_s7 = sphi %s515_s7, %s662_s7   ;;  %s473_s6 = sphi %s513_s6, %s661_s6  }
   0x8   : > { %s26_s16 = sadd.s32 1, %s493_s11  ;;  %s29_s17 = sadd.s32 1, %s497_s12 }
   0x9   : > { %p27_p0 = scmp.ge.s32.totalorder %s26_s16, 2  ;;  %s38_s18 = sadd.s32 1, %s481_s8 }
   0xa   : > { %p45_p1 = scmp.ne.s32.totalorder %s481_s8, %s477_s7  ;;  %p46_p2 = scmp.eq.s32.totalorder %s501_s13, 0 }
   0xb   : > { %s669_s16 = smov (%p27_p0, %s26_s16), 0  ;;  %s671_s17 = smov (!%p27_p0, %s29_s17), %s497_s12 }
   0xc   : > { %s34_s19 = ssub.s32 %s493_s11, %s669_s16  ;;  %p566_p3 = por %p46_p2, %p45_p1 }
   0xd   : > { %p31_p4 = scmp.ge.s32.totalorder %s671_s17, 2  ;;  %p51_p5 = scmp.ne.s32.totalorder %s477_s7, %s473_s6 }
   0xe   : > { %p52_p6 = scmp.eq.s32.totalorder %s278_s14, 0  ;;  %p77_p7 = scmp.eq.s32.totalorder %s278_s14, 3 }
   0xf   : > { %s673_s17 = smov (%p31_p4, %s671_s17), 0  ;;  %p83_p10 = scmp.eq.s32.totalorder %s279_s15, 3 }
  0x10   : > { %p574_p8 = por %p52_p6, %p51_p5  ;;  %p578_p9 = por %p77_p7, %p45_p1 }
  0x11   : > { %s33_s23 = ssub.s32 %s497_s12, %s673_s17  ;;  %p584_p12 = por %p83_p10, %p51_p5 }
  0x12   : > { %s35_s24 = sor.u32 %s34_s19, %s33_s23  ;;  %p305_p13 = scmp.lt.s32.totalorder %s501_s13, 4 }
  0x13   : > { %p36_p11 = scmp.eq.s32.totalorder %s35_s24, 0  ;;  %s103_s26 = sand.u32 1, %s481_s8  }
  0x14   : > { %s282_s28 = sshll.u32 %s103_s26, 2  ;;  %s283_s29 = sshll.u32 %s497_s12, 1 }
  0x15   : > { %s591_s27 = scalar_select %p36_p11, %s481_s8, %s38_s18  }
  0x16   : > { %s111_s30 = sadd.s32 %s493_s11, %s283_s29  ;;  %s107_s2 = scalar_lea.vmem [#allocation2], %s282_s28 }
  0x17   : > { %s117_s3 = sshll.u32 %s107_s2, 4  ;;  %s284_s4 = sshll.u32 %s111_s30, 2  ;;  %s118_s3 = int_to_ptr.vmem [resolvable:$true] %s117_s3 }
  0x18   : > { %s113_s15 = scalar_lea.hbm %s655_s0, %s284_s4  ;;  %p298_p0 = pnand %p305_p13, %p566_p3 }
  0x19   : > { %s115_s19 = sshll.u32 %s113_s15, 4  ;;  %p285_p1 = scmp.ge.s32.totalorder %s501_s13, 1  ;;  %s116_s19 = int_to_ptr.hbm [resolvable:$true] %s115_s19 }
  0x1a   : > { %s104_s23 = scalar_lea.sflag [#allocation3], %s103_s26  ;;  %p122_p2 = scmp.lt.s32.totalorder %s501_s13, 5 }
  0x1b   : > { %300 = dma.hbm_to_vmem [thread:$0]  (!%p298_p0), %s116_s19, 64, %s118_s3, %s104_s23  }
  0x1c   : > { %p123_p4 = pnand %p285_p1, %p122_p2 }
  0x1d   : > { %s603_s18 = sand.u32 (!%p123_p4), 1, %s477_s7  }
  0x1e   : > { %126 = sbr.rel (%p123_p4) target bundleno = 77 (0x4d), region = 24  ;;  %s286_s24 = sshll.u32 (!%p123_p4), %s603_s18, 2 }
  0x1f   : > { %s129_s28 = scalar_lea.sflag (!%p123_p4), [#allocation3], %s603_s18  ;;  %s132_s29 = scalar_lea.vmem (!%p123_p4), [#allocation2], %s286_s24 }
  0x23   : > { %464 = dma.done.wait (%p574_p8), %s129_s28, 64  }
  0x24   : > { %466 = vsyncadd (%p574_p8), %s129_s28, 4294967232  ;;  %v152_v0 = vld [vmem:[%s132_s29] sm:$0xf]  ;;  %vm154_vm0 = vcmask 1043456   ;;  %s289_s20 = sshll.u32 %s489_s10, 1  ;;  %s151_s4 = scalar_lea.vmem [#allocation5], %s286_s24 }
  0x25   : > { %v153_v1 = vmul.f32 %v152_v0, %v152_v0  ;;  %s186_s26 = sadd.s32 %s485_s9, %s289_s20  ;;  %s190_s5 = sshll.u32 %s151_s4, 4  ;;  %s191_s5 = int_to_ptr.vmem [resolvable:$true] %s190_s5 }
  0x26   : > { %s290_s21 = sshll.u32 %s186_s26, 2  ;;  %s176_s9 = scalar_lea.sflag [#allocation4], %s603_s18 }
  0x27   : > { %v155_v2 = vsel %vm154_vm0, %v153_v1, 0.0  ;;  %s188_s3 = scalar_lea.hbm %s656_s1, %s290_s21  ;;  %s423_s28 = scalar_lea.hbm %s656_s1, 16 }
  0x28   : > { %v156_v3 = vrot.slane %v155_v2, 4  ;;  %s192_s10 = sshll.u32 %s188_s3, 4  ;;  %s193_s10 = int_to_ptr.hbm [resolvable:$true] %s192_s10 }
  0x29   : > { %s417_s14 = sshra.s32 %s193_s10, 4  ;;  %s418_s14 = int_to_ptr.hbm [resolvable:$true] %s417_s14 }
  0x2a   : > { %v157_v4 = vadd.f32 %v156_v3, %v155_v2  ;;  %s419_s15 = scalar_lea.hbm %s418_s14, 4  ;;  %p424_p7 = scmp.lt.s32.totalorder %s418_s14, %s656_s1 }
  0x2b   : > { %p420_p3 = scmp.ne.s32.totalorder %s418_s14, %s419_s15  ;;  %p425_p8 = scmp.lt.s32.totalorder %s423_s28, %s419_s15 }
  0x2c   : > { %v158_v5 = vrot.slane %v157_v4, 2 }
  0x2d   : > { %p421_p5 = pnand %p420_p3, %p578_p9  ;;  %p426_p10 = por %p425_p8, %p424_p7 }
  0x2e   : > { %v159_v6 = vadd.f32 %v158_v5, %v157_v4 }
  0x2f   : > { %p422_p6 = pneg %p421_p5 }
  0x30   : > { %v160_v7 = vrot.slane %v159_v6, 1 }
  0x31   : > { %p427_p11 = pnand %p426_p10, %p422_p6 }
  0x32   : > { %v161_v8 = vadd.f32 %v160_v7, %v159_v6 }
  0x34   : > { %v162_v9 = vmax.f32 %v161_v8, 1e-24 }
  0x36   : > { %371 = vrsqrt.f32 %v162_v9  ;;  %vm169_vm1 = vweird.f32 %v162_v9 }
  0x3c   : > { %v372_v10 = vpop.eup %371 }
  0x3d   : > { %v164_v11 = vmul.f32 %v372_v10, %v162_v9  ;;  %vm170_vm2 = vweird.f32 %v372_v10 }
  0x3e   : > { %vm171_vm3 = vmor %vm169_vm1, %vm170_vm2 }
  0x3f   : > { %v165_v12 = vmul.f32 %v372_v10, %v164_v11 }
  0x41   : > { %v166_v13 = vmul.f32 0.5, %v165_v12 }
  0x43   : > { %v167_v14 = vsub.f32 1.5, %v166_v13 }
  0x45   : > { %v168_v15 = vmul.f32 %v372_v10, %v167_v14 }
  0x47   : > { %v172_v16 = vsel %vm171_vm3, %v372_v10, %v168_v15 }
  0x48   : > { %v173_v17 = vmul.f32 %v172_v16, %v152_v0 }
  0x4a   : > { %174 = vst [vmem:[%s151_s4] sm:$0xf] %v173_v17 }
  0x4b   : > { %430 = shalt.err (!%p427_p11)
}
  0x4c   : > { %295 = dma.vmem_to_hbm [thread:$0]  (%p578_p9), %s191_s5, 64, %s193_s10, %s176_s9  }
  0x4d PF: > { %p306_p13 = scmp.ge.s32.totalorder %s501_s13, 2  ;;  %s204_s18 = sand.u32 1, %s473_s6  }
  0x4e   : > { %s205_s20 = scalar_lea.sflag [#allocation4], %s204_s18 }
  0x4f   : > { %p302_p0 = pnand %p306_p13, %p584_p12 }
  0x51   : > { %p303_p1 = pneg %p302_p0 }
  0x53   : > { %468 = dma.done.wait (%p303_p1), %s205_s20, 64  }
  0x54   : > { %470 = vsyncadd (%p303_p1), %s205_s20, 4294967232  ;;  %s17_s13 = sadd.s32 1, %s501_s13   ;;  %s661_s6 = smov %s477_s7 }
  0x55   : > { %p14_p2 = scmp.ge.s32.totalorder %s17_s13, 6   ;;  %s662_s7 = smov %s481_s8 }
  0x56   : > { %s663_s8 = smov %s591_s27  ;;  %s664_s9 = smov %s493_s11 }
  0x57   : > { %s665_s10 = smov %s497_s12  ;;  %s666_s11 = smov %s669_s16 }
  0x58   : > { %s667_s12 = smov %s673_s17  ;;  %16 = sbr.rel (!%p14_p2) target bundleno = 7 (0x7), region = 69 }
  0x5d   :  { %211 = vsyncpa [#allocation3], 1 }
  0x5e   :  { %213 = vsyncpa [#allocation3 + $0x1], 1 }
  0x5f   :  { %214 = vsyncpa [#allocation4], 1 }
  0x60   :  { %216 = vsyncpa [#allocation4 + $0x1], 1 }

</bundles_post_ra>
